<compile_context>
chip_gen: v6e
topology: v6e:2x2x1
jax: 0.10.0
libtpu: 0.0.40
codegen_flags: <defaults>
</compile_context>

<pallas_src>
import functools

import jax
import jax.numpy as jnp
import numpy as np
from jax.experimental import pallas as pl
from jax.experimental.pallas import tpu as pltpu

EPS = 1e-5
LANE = 128


def _round_up(n, m):
    return ((n + m - 1) // m) * m


def simproj_kernel(x_ref, w1_ref, bn_ref, w2_ref, w3_ref, o_ref):
    # Batch dim is never padded, so 1/B over the ref shape is exact.
    inv_b = jnp.float32(1.0 / x_ref.shape[0])

    def bn_stats(h):
        # One pass over h for both moments (biased variance, torch training mode).
        s = jnp.sum(h, axis=0, keepdims=True)
        sq = jnp.sum(h * h, axis=0, keepdims=True)
        mean = s * inv_b
        var = sq * inv_b - mean * mean
        return mean, var

    def bn_affine_relu(h, g, b):
        mean, var = bn_stats(h)
        # Folded affine: 2 VALU ops per element (mul, add); rsqrt rides the EUP.
        scale = g * jax.lax.rsqrt(var + EPS)
        shift = b - mean * scale
        return jnp.maximum(h * scale + shift, 0.0)

    g1 = bn_ref[0:1, :]
    b1 = bn_ref[1:2, :]
    g2 = bn_ref[2:3, :]
    b2 = bn_ref[3:4, :]

    # Layer 1: Linear (bf16 operands, f32 acc) -> BN -> ReLU
    h1 = jnp.dot(x_ref[...], w1_ref[...], preferred_element_type=jnp.float32)
    h1 = bn_affine_relu(h1, g1, b1)

    # Layer 2: Linear -> BN -> ReLU
    h2 = jnp.dot(h1.astype(jnp.bfloat16), w2_ref[...],
                 preferred_element_type=jnp.float32)
    h2 = bn_affine_relu(h2, g2, b2)

    # Layer 3: Linear -> BN (affine=False)
    h3 = jnp.dot(h2.astype(jnp.bfloat16), w3_ref[...],
                 preferred_element_type=jnp.float32)
    mean, var = bn_stats(h3)
    scale = jax.lax.rsqrt(var + EPS)
    o_ref[...] = h3 * scale - mean * scale


def prepare_params(w1, g1, b1, w2, g2, b2, w3):
    """One-time padding/casting of the persistent (param-side) buffers.

    Weights are zero-padded to 128-lane multiples and cast to bf16; the four
    BN affine vectors are merged into a single (8, Hp) f32 operand
    (rows 0=g1, 1=b1, 2=g2, 3=b2; padded channels get gamma=0 / beta=0).
    """
    D, H = w1.shape
    P = w3.shape[1]
    Dp, Hp, Pp = (_round_up(d, LANE) for d in (D, H, P))

    w1p = jnp.zeros((Dp, Hp), jnp.bfloat16).at[:D, :H].set(w1.astype(jnp.bfloat16))
    w2p = jnp.zeros((Hp, Hp), jnp.bfloat16).at[:H, :H].set(w2.astype(jnp.bfloat16))
    w3p = jnp.zeros((Hp, Pp), jnp.bfloat16).at[:H, :P].set(w3.astype(jnp.bfloat16))

    bn = jnp.zeros((8, Hp), jnp.float32)
    bn = bn.at[0, :H].set(jnp.reshape(g1, (-1,)))
    bn = bn.at[1, :H].set(jnp.reshape(b1, (-1,)))
    bn = bn.at[2, :H].set(jnp.reshape(g2, (-1,)))
    bn = bn.at[3, :H].set(jnp.reshape(b2, (-1,)))

    return jax.block_until_ready((w1p, bn, w2p, w3p))


@functools.partial(jax.jit, static_argnames=("proj_out",))
def simproj_forward(x, w1p, bn, w2p, w3p, *, proj_out):
    B, D = x.shape
    Dp = w1p.shape[0]
    Pp = w3p.shape[1]

    # Per-call work on the input only: lane-pad + bf16 cast of x.
    xp = jnp.zeros((B, Dp), jnp.bfloat16).at[:, :D].set(x.astype(jnp.bfloat16))

    vmem = pl.BlockSpec(memory_space=pltpu.MemorySpace.VMEM)
    out_p = pl.pallas_call(
        simproj_kernel,
        out_shape=jax.ShapeDtypeStruct((B, Pp), jnp.float32),
        in_specs=[vmem] * 5,
        out_specs=vmem,
        compiler_params=pltpu.CompilerParams(
            vmem_limit_bytes=32 * 1024 * 1024),
    )(xp, w1p, bn, w2p, w3p)
    return out_p[:, :proj_out]


def simproj_reference(x, w1, g1, b1, w2, g2, b2, w3):
    # Pure-JAX reference with the same bf16-operand / f32-accumulate matmuls,
    # centered-form BN (training mode, biased variance).
    def bn(h):
        mean = jnp.mean(h, axis=0, keepdims=True)
        var = jnp.mean((h - mean) ** 2, axis=0, keepdims=True)
        return (h - mean) * jax.lax.rsqrt(var + EPS)

    def mm(a, w):
        return jnp.dot(a.astype(jnp.bfloat16), w.astype(jnp.bfloat16),
                       preferred_element_type=jnp.float32)

    h1 = jnp.maximum(bn(mm(x, w1)) * g1 + b1, 0.0)
    h2 = jnp.maximum(bn(mm(h1, w2)) * g2 + b2, 0.0)
    return bn(mm(h2, w3))


if __name__ == "__main__":
    # Small shapes consistent with the module: x is (batch, dim).
    # NOTE: for real SimSiam training, concatenate both augmented views into
    # one call so B >= 128 and the MXU rows are actually filled.
    B, D, H, P = 8, 32, 64, 16  # projection_hidden_size=64, projection_out=16

    key = jax.random.PRNGKey(0)
    kx, k1, k2, k3 = jax.random.split(key, 4)

    x = jax.random.normal(kx, (B, D), dtype=jnp.float32)

    # Deterministic parameter init (kaiming-uniform-like bounds), stored as (in, out).
    w1 = jax.random.uniform(k1, (D, H), jnp.float32, -1.0, 1.0) / jnp.sqrt(D)
    w2 = jax.random.uniform(k2, (H, H), jnp.float32, -1.0, 1.0) / jnp.sqrt(H)
    w3 = jax.random.uniform(k3, (H, P), jnp.float32, -1.0, 1.0) / jnp.sqrt(H)

    # BatchNorm affine params at their PyTorch init values (gamma=1, beta=0).
    g1 = jnp.ones((1, H), jnp.float32)
    b1 = jnp.zeros((1, H), jnp.float32)
    g2 = jnp.ones((1, H), jnp.float32)
    b2 = jnp.zeros((1, H), jnp.float32)

    # One-time param preparation (would be cached alongside the module state).
    w1p, bn, w2p, w3p = prepare_params(w1, g1, b1, w2, g2, b2, w3)

    out = simproj_forward(x, w1p, bn, w2p, w3p, proj_out=P)
    out = jax.block_until_ready(out)

    ref = simproj_reference(x, w1, g1, b1, w2, g2, b2, w3)
    np.testing.assert_allclose(np.asarray(out), np.asarray(ref),
                               rtol=1e-3, atol=1e-3)

    print("KERNEL_OK")
</pallas_src>

<mosaic_0001>
module attributes {stable_mosaic.version = 11 : i64} {
  func.func @simproj_kernel(%arg0: memref<8x128xbf16, #tpu.memory_space<vmem>>, %arg1: memref<128x128xbf16, #tpu.memory_space<vmem>>, %arg2: memref<8x128xf32, #tpu.memory_space<vmem>>, %arg3: memref<128x128xbf16, #tpu.memory_space<vmem>>, %arg4: memref<128x128xbf16, #tpu.memory_space<vmem>>, %arg5: memref<8x128xf32, #tpu.memory_space<vmem>>) attributes {dimension_semantics = [], scalar_prefetch = 0 : i64, scratch_operands = 0 : i64, tpu.core_type = #tpu.core_type<tc>} {
    %c0 = arith.constant 0 : index
    %c0_0 = arith.constant 0 : index
    %0 = vector.load %arg2[%c0, %c0_0] : memref<8x128xf32, #tpu.memory_space<vmem>>, vector<1x128xf32>
    %c1 = arith.constant 1 : index
    %c0_1 = arith.constant 0 : index
    %1 = vector.load %arg2[%c1, %c0_1] : memref<8x128xf32, #tpu.memory_space<vmem>>, vector<1x128xf32>
    %c2 = arith.constant 2 : index
    %c0_2 = arith.constant 0 : index
    %2 = vector.load %arg2[%c2, %c0_2] : memref<8x128xf32, #tpu.memory_space<vmem>>, vector<1x128xf32>
    %c3 = arith.constant 3 : index
    %c0_3 = arith.constant 0 : index
    %3 = vector.load %arg2[%c3, %c0_3] : memref<8x128xf32, #tpu.memory_space<vmem>>, vector<1x128xf32>
    %c0_4 = arith.constant 0 : index
    %c0_5 = arith.constant 0 : index
    %4 = vector.load %arg0[%c0_4, %c0_5] : memref<8x128xbf16, #tpu.memory_space<vmem>>, vector<8x128xbf16>
    %c0_6 = arith.constant 0 : index
    %c0_7 = arith.constant 0 : index
    %5 = vector.load %arg1[%c0_6, %c0_7] : memref<128x128xbf16, #tpu.memory_space<vmem>>, vector<128x128xbf16>
    %cst = arith.constant dense<0.000000e+00> : vector<8x128xf32>
    %6 = tpu.matmul %4, %5, %cst {dimension_numbers = #tpu.dot_dimension_numbers<[1], [0], [0], [1], [0, 0, 1, 1], [], []>} : vector<8x128xbf16>, vector<128x128xbf16>, vector<8x128xf32> -> vector<8x128xf32>
    %cst_8 = arith.constant dense<0.000000e+00> : vector<128xf32>
    %7 = vector.multi_reduction <add>, %6, %cst_8 [0] : vector<8x128xf32> to vector<128xf32>
    %8 = vector.shape_cast %7 : vector<128xf32> to vector<1x128xf32>
    %9 = arith.mulf %6, %6 : vector<8x128xf32>
    %cst_9 = arith.constant dense<0.000000e+00> : vector<128xf32>
    %10 = vector.multi_reduction <add>, %9, %cst_9 [0] : vector<8x128xf32> to vector<128xf32>
    %11 = vector.shape_cast %10 : vector<128xf32> to vector<1x128xf32>
    %cst_10 = arith.constant 1.250000e-01 : f32
    %12 = vector.broadcast %cst_10 : f32 to vector<1x128xf32>
    %13 = arith.mulf %8, %12 : vector<1x128xf32>
    %cst_11 = arith.constant 1.250000e-01 : f32
    %14 = vector.broadcast %cst_11 : f32 to vector<1x128xf32>
    %15 = arith.mulf %11, %14 : vector<1x128xf32>
    %16 = arith.mulf %13, %13 : vector<1x128xf32>
    %17 = arith.subf %15, %16 : vector<1x128xf32>
    %cst_12 = arith.constant 9.99999974E-6 : f32
    %18 = vector.broadcast %cst_12 : f32 to vector<1x128xf32>
    %19 = arith.addf %17, %18 : vector<1x128xf32>
    %20 = math.rsqrt %19 : vector<1x128xf32>
    %21 = arith.mulf %0, %20 : vector<1x128xf32>
    %22 = arith.mulf %13, %21 : vector<1x128xf32>
    %23 = arith.subf %1, %22 : vector<1x128xf32>
    %24 = vector.broadcast %21 : vector<1x128xf32> to vector<8x128xf32>
    %25 = arith.mulf %6, %24 : vector<8x128xf32>
    %26 = vector.broadcast %23 : vector<1x128xf32> to vector<8x128xf32>
    %27 = arith.addf %25, %26 : vector<8x128xf32>
    %cst_13 = arith.constant 0.000000e+00 : f32
    %28 = vector.broadcast %cst_13 : f32 to vector<8x128xf32>
    %29 = arith.maximumf %27, %28 : vector<8x128xf32>
    %30 = arith.truncf %29 : vector<8x128xf32> to vector<8x128xbf16>
    %c0_14 = arith.constant 0 : index
    %c0_15 = arith.constant 0 : index
    %31 = vector.load %arg3[%c0_14, %c0_15] : memref<128x128xbf16, #tpu.memory_space<vmem>>, vector<128x128xbf16>
    %cst_16 = arith.constant dense<0.000000e+00> : vector<8x128xf32>
    %32 = tpu.matmul %30, %31, %cst_16 {dimension_numbers = #tpu.dot_dimension_numbers<[1], [0], [0], [1], [0, 0, 1, 1], [], []>} : vector<8x128xbf16>, vector<128x128xbf16>, vector<8x128xf32> -> vector<8x128xf32>
    %cst_17 = arith.constant dense<0.000000e+00> : vector<128xf32>
    %33 = vector.multi_reduction <add>, %32, %cst_17 [0] : vector<8x128xf32> to vector<128xf32>
    %34 = vector.shape_cast %33 : vector<128xf32> to vector<1x128xf32>
    %35 = arith.mulf %32, %32 : vector<8x128xf32>
    %cst_18 = arith.constant dense<0.000000e+00> : vector<128xf32>
    %36 = vector.multi_reduction <add>, %35, %cst_18 [0] : vector<8x128xf32> to vector<128xf32>
    %37 = vector.shape_cast %36 : vector<128xf32> to vector<1x128xf32>
    %cst_19 = arith.constant 1.250000e-01 : f32
    %38 = vector.broadcast %cst_19 : f32 to vector<1x128xf32>
    %39 = arith.mulf %34, %38 : vector<1x128xf32>
    %cst_20 = arith.constant 1.250000e-01 : f32
    %40 = vector.broadcast %cst_20 : f32 to vector<1x128xf32>
    %41 = arith.mulf %37, %40 : vector<1x128xf32>
    %42 = arith.mulf %39, %39 : vector<1x128xf32>
    %43 = arith.subf %41, %42 : vector<1x128xf32>
    %cst_21 = arith.constant 9.99999974E-6 : f32
    %44 = vector.broadcast %cst_21 : f32 to vector<1x128xf32>
    %45 = arith.addf %43, %44 : vector<1x128xf32>
    %46 = math.rsqrt %45 : vector<1x128xf32>
    %47 = arith.mulf %2, %46 : vector<1x128xf32>
    %48 = arith.mulf %39, %47 : vector<1x128xf32>
    %49 = arith.subf %3, %48 : vector<1x128xf32>
    %50 = vector.broadcast %47 : vector<1x128xf32> to vector<8x128xf32>
    %51 = arith.mulf %32, %50 : vector<8x128xf32>
    %52 = vector.broadcast %49 : vector<1x128xf32> to vector<8x128xf32>
    %53 = arith.addf %51, %52 : vector<8x128xf32>
    %cst_22 = arith.constant 0.000000e+00 : f32
    %54 = vector.broadcast %cst_22 : f32 to vector<8x128xf32>
    %55 = arith.maximumf %53, %54 : vector<8x128xf32>
    %56 = arith.truncf %55 : vector<8x128xf32> to vector<8x128xbf16>
    %c0_23 = arith.constant 0 : index
    %c0_24 = arith.constant 0 : index
    %57 = vector.load %arg4[%c0_23, %c0_24] : memref<128x128xbf16, #tpu.memory_space<vmem>>, vector<128x128xbf16>
    %cst_25 = arith.constant dense<0.000000e+00> : vector<8x128xf32>
    %58 = tpu.matmul %56, %57, %cst_25 {dimension_numbers = #tpu.dot_dimension_numbers<[1], [0], [0], [1], [0, 0, 1, 1], [], []>} : vector<8x128xbf16>, vector<128x128xbf16>, vector<8x128xf32> -> vector<8x128xf32>
    %cst_26 = arith.constant dense<0.000000e+00> : vector<128xf32>
    %59 = vector.multi_reduction <add>, %58, %cst_26 [0] : vector<8x128xf32> to vector<128xf32>
    %60 = vector.shape_cast %59 : vector<128xf32> to vector<1x128xf32>
    %61 = arith.mulf %58, %58 : vector<8x128xf32>
    %cst_27 = arith.constant dense<0.000000e+00> : vector<128xf32>
    %62 = vector.multi_reduction <add>, %61, %cst_27 [0] : vector<8x128xf32> to vector<128xf32>
    %63 = vector.shape_cast %62 : vector<128xf32> to vector<1x128xf32>
    %cst_28 = arith.constant 1.250000e-01 : f32
    %64 = vector.broadcast %cst_28 : f32 to vector<1x128xf32>
    %65 = arith.mulf %60, %64 : vector<1x128xf32>
    %cst_29 = arith.constant 1.250000e-01 : f32
    %66 = vector.broadcast %cst_29 : f32 to vector<1x128xf32>
    %67 = arith.mulf %63, %66 : vector<1x128xf32>
    %68 = arith.mulf %65, %65 : vector<1x128xf32>
    %69 = arith.subf %67, %68 : vector<1x128xf32>
    %cst_30 = arith.constant 9.99999974E-6 : f32
    %70 = vector.broadcast %cst_30 : f32 to vector<1x128xf32>
    %71 = arith.addf %69, %70 : vector<1x128xf32>
    %72 = math.rsqrt %71 : vector<1x128xf32>
    %73 = vector.broadcast %72 : vector<1x128xf32> to vector<8x128xf32>
    %74 = arith.mulf %58, %73 : vector<8x128xf32>
    %75 = arith.mulf %65, %72 : vector<1x128xf32>
    %76 = vector.broadcast %75 : vector<1x128xf32> to vector<8x128xf32>
    %77 = arith.subf %74, %76 : vector<8x128xf32>
    %c0_31 = arith.constant 0 : index
    %c0_32 = arith.constant 0 : index
    %78 = vector.load %arg5[%c0_31, %c0_32] : memref<8x128xf32, #tpu.memory_space<vmem>>, vector<8x128xf32>
    tpu.vector_store %arg5[%c0_31, %c0_32], %77 {strides = array<i32>} : memref<8x128xf32, #tpu.memory_space<vmem>>, vector<8x128xf32>,
    return
  }
}

</mosaic_0001>

<bundles_post_ra>
// kernel: simproj_forward.1
= control target key start
LH: loop header
LB: loop body
LE: loop exit
PB: predicated region body
PF: predicated region fallthrough
CT: control target
= control target key end

     0   :  { %10 = vsyncpa [#allocation3], 0  ;;  %s823_s0 = inlined_call_operand.vmem [shape: bf16[8,128], index: 0, kind: input, shape index: {}]   ;;  %s824_s1 = inlined_call_operand.hbm [shape: bf16[128,128], index: 1, kind: input, shape index: {}]   ;;  %s825_s2 = inlined_call_operand.vmem [shape: f32[8,128], index: 2, kind: input, shape index: {}]   ;;  %s826_s3 = inlined_call_operand.hbm [shape: bf16[128,128], index: 3, kind: input, shape index: {}]   ;;  %s827_s4 = inlined_call_operand.hbm [shape: bf16[128,128], index: 4, kind: input, shape index: {}]   ;;  %s828_s5 = inlined_call_operand.hbm [shape: f32[8,128], index: 5, kind: output, shape index: {}]  }
   0x1   :  { %11 = vsyncpa [#allocation6], 0 }
   0x2   :  { %12 = vsyncpa [#allocation4], 0  ;;  %s722_s18 = smov [#allocation5]   ;;  %s723_s20 = smov [#allocation2]  }
   0x3   :  { %s34_s19 = sshll.u32 %s722_s18, 4  ;;  %s20_s21 = sshll.u32 %s723_s20, 4  ;;  %s35_s19 = int_to_ptr.vmem [resolvable:$true] %s34_s19  ;;  %s21_s21 = int_to_ptr.vmem [resolvable:$true] %s20_s21 }
   0x4   :  { %s644_s22 = scalar_lea.vmem %s35_s19, 1024  ;;  %p649_p1 = scmp.lt.s32.totalorder %s35_s19, %s35_s19 }
   0x5   :  { %p645_p0 = scmp.ne.s32.totalorder %s35_s19, %s644_s22  ;;  %p650_p2 = scmp.lt.s32.totalorder %s644_s22, %s644_s22 }
   0x7   :  { %p651_p3 = por %p650_p2, %p649_p1 }
   0x9   :  { %p652_p4 = pnand %p651_p3, %p645_p0 }
   0xb   :  { %655 = shalt.err (!%p652_p4)
}
   0xc   :  { %s724_s23 = smov 64   ;;  %s725_s24 = smov 4  }
   0xd   :  { %40 = dma.hbm_to_vmem [thread:$0]  %s826_s3, 1024, %s35_s19, [#allocation6], %s724_s23, %s724_s23, %s725_s24  }
   0xe   :  { %s664_s27 = scalar_lea.vmem %s21_s21, 1024  ;;  %p669_p6 = scmp.lt.s32.totalorder %s21_s21, %s21_s21 }
   0xf   :  { %p665_p5 = scmp.ne.s32.totalorder %s21_s21, %s664_s27  ;;  %p670_p7 = scmp.lt.s32.totalorder %s664_s27, %s664_s27 }
  0x11   :  { %p671_p8 = por %p670_p7, %p669_p6 }
  0x13   :  { %p672_p9 = pnand %p671_p8, %p665_p5 }
  0x15   :  { %675 = shalt.err (!%p672_p9)
}
  0x16   :  { %26 = dma.hbm_to_vmem [thread:$0]  %s824_s1, 1024, %s21_s21, [#allocation3], %s724_s23, %s724_s23, %s725_s24  }
  0x17   :  { %s726_s30 = smov [#allocation7]  }
  0x18   :  { %s46_s6 = sshll.u32 %s726_s30, 4  ;;  %s47_s6 = int_to_ptr.vmem [resolvable:$true] %s46_s6 }
  0x19   :  { %s684_s7 = scalar_lea.vmem %s47_s6, 1024  ;;  %p689_p11 = scmp.lt.s32.totalorder %s47_s6, %s47_s6 }
  0x1a   :  { %p685_p10 = scmp.ne.s32.totalorder %s47_s6, %s684_s7  ;;  %p690_p12 = scmp.lt.s32.totalorder %s684_s7, %s684_s7 }
  0x1c   :  { %p691_p13 = por %p690_p12, %p689_p11 }
  0x1e   :  { %p692_p0 = pnand %p691_p13, %p685_p10 }
  0x20   :  { %695 = shalt.err (!%p692_p0)
}
  0x21   :  { %52 = dma.hbm_to_vmem [thread:$0]  %s827_s4, 1024, %s47_s6, [#allocation6], %s724_s23, %s724_s23, %s725_s24  }
  0x22   :  { %716 = dma.done.wait [#allocation3], 1024  }
  0x23   :  { %717 = vsyncadd [#allocation3], 4294966272 }
  0x24   :  { %718 = dma.done.wait [#allocation6], 2048  }
  0x25   :  { %719 = vsyncadd [#allocation6], 4294965248  ;;  %v727_v0 = vmov 0.0   ;;  %vm728_vm0 = vmmov 0   ;;  %v606_v1 = vld [vmem:[#allocation2 + $0x38] sm:$0xff]   ;;  %v607_v2 = vld [vmem:[#allocation2 + $0x30] sm:$0xff]   ;;  %v194_v40 = vlaneseq }
  0x26   :  { %538 = vmatprep.subr.bf16.mxu0 %v727_v0  ;;  %554 = vmatprep.mubr.msk.bf16.mxu0 %vm728_vm0, %v727_v0  ;;  %v608_v3 = vld [vmem:[#allocation2 + $0x28] sm:$0xff]   ;;  %v609_v4 = vld [vmem:[#allocation2 + $0x20] sm:$0xff]   ;;  %v610_v5 = vld [vmem:[#allocation2 + $0x18] sm:$0xff]  }
  0x27   :  { %558 = vmatprep.subr.bf16.mxu1 %v727_v0  ;;  %574 = vmatprep.mubr.msk.bf16.mxu1 %vm728_vm0, %v727_v0  ;;  %v611_v6 = vld [vmem:[#allocation2 + $0x10] sm:$0xff]   ;;  %v612_v7 = vld [vmem:[#allocation2 + $0x8] sm:$0xff]   ;;  %v613_v8 = vld [vmem:[#allocation2] sm:$0xff]   ;;  %v195_v41 = vshrl.u32 %v194_v40, 7 }
  0x28   :  { %539 = vmatpush3.bf16.msra.mxu0 %v606_v1  ;;  %v67_v9 = vld [vmem:[%s823_s0] sm:$0xf]  ;;  %v614_v10 = vld [vmem:[#allocation5 + $0x38] sm:$0xff]   ;;  %v615_v11 = vld [vmem:[#allocation5 + $0x30] sm:$0xff]  }
  0x29   :  { %540 = vmatprep.subr.bf16.mxu0 %v727_v0  ;;  %559 = vmatpush3.bf16.msra.mxu1 %v614_v10  ;;  %v616_v12 = vld [vmem:[#allocation5 + $0x28] sm:$0xff]   ;;  %v617_v13 = vld [vmem:[#allocation5 + $0x20] sm:$0xff]   ;;  %v618_v14 = vld [vmem:[#allocation5 + $0x18] sm:$0xff]   ;;  %v798_v43 = vsub.s32 0, %v195_v41 }
  0x2a   :  { %560 = vmatprep.subr.bf16.mxu1 %v727_v0  ;;  %v619_v15 = vld [vmem:[#allocation5 + $0x10] sm:$0xff]   ;;  %v620_v16 = vld [vmem:[#allocation5 + $0x8] sm:$0xff]   ;;  %v621_v17 = vld [vmem:[#allocation5] sm:$0xff]  }
  0x2b   :  { %v63_v42 = vld [vmem:[%s825_s2] sm:$0x1]  ;;  %v64_v46 = vld [vmem:[%s825_s2 + $0x1] sm:$0x1]  ;;  %v622_v55 = vld [vmem:[#allocation7 + $0x38] sm:$0xff]  }
  0x2c   :  { %541 = vmatpush3.bf16.msra.mxu0 %v607_v2  ;;  %v623_v56 = vld [vmem:[#allocation7 + $0x30] sm:$0xff]   ;;  %v624_v57 = vld [vmem:[#allocation7 + $0x28] sm:$0xff]   ;;  %v625_v58 = vld [vmem:[#allocation7 + $0x20] sm:$0xff]  }
  0x2d   :  { %542 = vmatprep.subr.bf16.mxu0 %v727_v0  ;;  %561 = vmatpush3.bf16.msra.mxu1 %v615_v11  ;;  %v626_v59 = vld [vmem:[#allocation7 + $0x18] sm:$0xff]   ;;  %v627_v60 = vld [vmem:[#allocation7 + $0x10] sm:$0xff]   ;;  %v628_v61 = vld [vmem:[#allocation7 + $0x8] sm:$0xff]  }
  0x2e   :  { %562 = vmatprep.subr.bf16.mxu1 %v727_v0  ;;  %v629_v62 = vld [vmem:[#allocation7] sm:$0xff]  }
  0x30   :  { %543 = vmatpush3.bf16.msra.mxu0 %v608_v3 }
  0x31   :  { %544 = vmatprep.subr.bf16.mxu0 %v727_v0  ;;  %563 = vmatpush3.bf16.msra.mxu1 %v616_v12 }
  0x32   :  { %564 = vmatprep.subr.bf16.mxu1 %v727_v0 }
  0x34   :  { %545 = vmatpush3.bf16.msra.mxu0 %v609_v4 }
  0x35   :  { %546 = vmatprep.subr.bf16.mxu0 %v727_v0  ;;  %565 = vmatpush3.bf16.msra.mxu1 %v617_v13 }
  0x36   :  { %566 = vmatprep.subr.bf16.mxu1 %v727_v0 }
  0x38   :  { %547 = vmatpush3.bf16.msra.mxu0 %v610_v5 }
  0x39   :  { %548 = vmatprep.subr.bf16.mxu0 %v727_v0  ;;  %567 = vmatpush3.bf16.msra.mxu1 %v618_v14 }
  0x3a   :  { %568 = vmatprep.subr.bf16.mxu1 %v727_v0 }
  0x3c   :  { %549 = vmatpush3.bf16.msra.mxu0 %v611_v6 }
  0x3d   :  { %550 = vmatprep.subr.bf16.mxu0 %v727_v0  ;;  %569 = vmatpush3.bf16.msra.mxu1 %v619_v15 }
  0x3e   :  { %570 = vmatprep.subr.bf16.mxu1 %v727_v0 }
  0x40   :  { %551 = vmatpush3.bf16.msra.mxu0 %v612_v7 }
  0x41   :  { %552 = vmatprep.subr.bf16.mxu0 %v727_v0  ;;  %571 = vmatpush3.bf16.msra.mxu1 %v620_v16 }
  0x42   :  { %572 = vmatprep.subr.bf16.mxu1 %v727_v0 }
  0x44   :  { %553 = vmatpush3.bf16.msra.mxu0 %v613_v8 }
  0x45   :  { %578 = vmatprep.subr.bf16.mxu0 %v727_v0  ;;  %573 = vmatpush3.bf16.msra.mxu1 %v621_v17 }
  0x47   :  { %555 = vmatmul.mubr.bf16.vlgmr.msra.gmra.mxu0 %v67_v9 }
  0x48   :  { %594 = vmatprep.mubr.msk.bf16.mxu0 %vm728_vm0, %v727_v0  ;;  %579 = vmatpush3.bf16.msra.mxu0 %v622_v55 }
  0x49   :  { %580 = vmatprep.subr.bf16.mxu0 %v727_v0 }
  0x4c   :  { %581 = vmatpush3.bf16.msra.mxu0 %v623_v56 }
  0x4d   :  { %582 = vmatprep.subr.bf16.mxu0 %v727_v0 }
  0x50   :  { %583 = vmatpush3.bf16.msra.mxu0 %v624_v57 }
  0x51   :  { %584 = vmatprep.subr.bf16.mxu0 %v727_v0 }
  0x54   :  { %585 = vmatpush3.bf16.msra.mxu0 %v625_v58 }
  0x55   :  { %586 = vmatprep.subr.bf16.mxu0 %v727_v0 }
  0x58   :  { %587 = vmatpush3.bf16.msra.mxu0 %v626_v59 }
  0x59   :  { %588 = vmatprep.subr.bf16.mxu0 %v727_v0 }
  0x5c   :  { %589 = vmatpush3.bf16.msra.mxu0 %v627_v60 }
  0x5d   :  { %590 = vmatprep.subr.bf16.mxu0 %v727_v0 }
  0x60   :  { %591 = vmatpush3.bf16.msra.mxu0 %v628_v61 }
  0x61   :  { %592 = vmatprep.subr.bf16.mxu0 %v727_v0 }
  0x64   :  { %593 = vmatpush3.bf16.msra.mxu0 %v629_v62 }
 0x107   :  { %v166_v18 = vpop.f32.mrf.mxu0 }
 0x108   :  { %v172_v19 = vrot.slane %v166_v18, 4  ;;  %v178_v20 = vmul.f32 %v166_v18, %v166_v18 }
 0x109   :  { %v556_v21 = vpop.f32.mrf.mxu0 }
 0x10a   :  { %v173_v22 = vadd.f32 %v172_v19, %v166_v18  ;;  %v179_v23 = vrot.slane %v178_v20, 4  ;;  %v65_v21 = vld [vmem:[%s825_s2 + $0x2] sm:$0x1] }
 0x10b   :  { %v169_v24 = vpop.f32.mrf.mxu0 }
 0x10c   :  { %v174_v25 = vrot.slane %v173_v22, 2  ;;  %v180_v26 = vadd.f32 %v179_v23, %v178_v20  ;;  %v66_v24 = vld [vmem:[%s825_s2 + $0x3] sm:$0x1]  ;;  %s729_s2 = smov [#allocation8]  }
 0x10d   :  { %v557_v27 = vpop.f32.mrf.mxu0  ;;  %s477_s16 = sshll.u32 %s729_s2, 4  ;;  %s478_s16 = int_to_ptr.vmem [resolvable:$true] %s477_s16 }
 0x10e   :  { %v175_v28 = vadd.f32 %v174_v25, %v173_v22  ;;  %v181_v29 = vrot.slane %v180_v26, 2  ;;  %s696_s17 = scalar_lea.vmem %s478_s16, 128  ;;  %p701_p2 = scmp.lt.s32.totalorder %s478_s16, %s478_s16 }
 0x10f   :  { %p697_p1 = scmp.ne.s32.totalorder %s478_s16, %s696_s17  ;;  %p702_p3 = scmp.lt.s32.totalorder %s696_s17, %s696_s17 }
 0x110   :  { %v176_v30 = vrot.slane %v175_v28, 1  ;;  %v182_v31 = vadd.f32 %v181_v29, %v180_v26 }
 0x111   :  { %p703_p4 = por %p702_p3, %p701_p2 }
 0x112   :  { %v177_v32 = vadd.f32 %v176_v30, %v175_v28  ;;  %v183_v33 = vrot.slane %v182_v31, 1 }
 0x113   :  { %p704_p5 = pnand %p703_p4, %p697_p1 }
 0x114   :  { %v184_v34 = vadd.f32 %v183_v33, %v182_v31  ;;  %v185_v35 = vmul.f32 0.125, %v177_v32 }
 0x116   :  { %v186_v36 = vmul.f32 0.125, %v184_v34  ;;  %v187_v37 = vmul.f32 %v185_v35, %v185_v35 }
 0x118   :  { %v188_v38 = vsub.f32 %v186_v36, %v187_v37 }
 0x11a   :  { %v189_v39 = vadd.f32 1e-05, %v188_v38 }
 0x11c   :  { %630 = vrsqrt.f32 %v189_v39 }
 0x129   :  { %v631_v44 = vpop.eup %630 }
 0x12a   :  { %v191_v45 = vmul.f32 %v631_v44, %v63_v42 }
 0x12c   :  { %v197_v47 = vrot.slane %v191_v45, %v798_v43  ;;  %v192_v48 = vmul.f32 %v191_v45, %v185_v35 }
 0x12e   :  { %v193_v49 = vsub.f32 %v64_v46, %v192_v48  ;;  %v198_v50 = vmul.f32 %v197_v47, %v166_v18 }
 0x130   :  { %v202_v51 = vrot.slane %v193_v49, %v798_v43 }
 0x132   :  { %v203_v52 = vadd.f32 %v202_v51, %v198_v50 }
 0x134   :  { %v204_v53 = vmax.f32 %v203_v52, 0.0 }
 0x136   :  { %v205_v54 = vpack.c.bf16 %v204_v53, %v204_v53 }
 0x138   :  { %575 = vmatmul.mubr.bf16.vlgmr.msra.gmra.mxu1 %v205_v54 }
 0x1f8   :  { %v304_v63 = vpop.f32.mrf.mxu1 }
 0x1f9   :  { %v310_v1 = vrot.slane %v304_v63, 4  ;;  %v316_v2 = vmul.f32 %v304_v63, %v304_v63 }
 0x1fa   :  { %v576_v3 = vpop.f32.mrf.mxu1 }
 0x1fb   :  { %v311_v4 = vadd.f32 %v310_v1, %v304_v63  ;;  %v317_v5 = vrot.slane %v316_v2, 4 }
 0x1fc   :  { %v307_v6 = vpop.f32.mrf.mxu1 }
 0x1fd   :  { %v312_v7 = vrot.slane %v311_v4, 2  ;;  %v318_v8 = vadd.f32 %v317_v5, %v316_v2 }
 0x1fe   :  { %v577_v9 = vpop.f32.mrf.mxu1 }
 0x1ff   :  { %v313_v10 = vadd.f32 %v312_v7, %v311_v4  ;;  %v319_v11 = vrot.slane %v318_v8, 2 }
 0x201   :  { %v314_v12 = vrot.slane %v313_v10, 1  ;;  %v320_v13 = vadd.f32 %v319_v11, %v318_v8 }
 0x203   :  { %v315_v14 = vadd.f32 %v314_v12, %v313_v10  ;;  %v321_v15 = vrot.slane %v320_v13, 1 }
 0x205   :  { %v322_v16 = vadd.f32 %v321_v15, %v320_v13  ;;  %v323_v0 = vmul.f32 0.125, %v315_v14 }
 0x207   :  { %v324_v17 = vmul.f32 0.125, %v322_v16  ;;  %v325_v18 = vmul.f32 %v323_v0, %v323_v0 }
 0x209   :  { %v326_v19 = vsub.f32 %v324_v17, %v325_v18 }
 0x20b   :  { %v327_v20 = vadd.f32 1e-05, %v326_v19 }
 0x20d   :  { %632 = vrsqrt.f32 %v327_v20 }
 0x21a   :  { %v633_v22 = vpop.eup %632 }
 0x21b   :  { %v329_v23 = vmul.f32 %v633_v22, %v65_v21 }
 0x21d   :  { %v330_v25 = vmul.f32 %v329_v23, %v323_v0  ;;  %v335_v26 = vrot.slane %v329_v23, %v798_v43 }
 0x21f   :  { %v331_v27 = vsub.f32 %v66_v24, %v330_v25  ;;  %v336_v28 = vmul.f32 %v335_v26, %v304_v63 }
 0x221   :  { %v340_v29 = vrot.slane %v331_v27, %v798_v43 }
 0x223   :  { %v341_v30 = vadd.f32 %v340_v29, %v336_v28 }
 0x225   :  { %v342_v31 = vmax.f32 %v341_v30, 0.0 }
 0x227   :  { %v343_v32 = vpack.c.bf16 %v342_v31, %v342_v31 }
 0x229   :  { %595 = vmatmul.mubr.bf16.vlgmr.msra.gmra.mxu0 %v343_v32 }
 0x2e9   :  { %v442_v33 = vpop.f32.mrf.mxu0 }
 0x2ea   :  { %v448_v34 = vrot.slane %v442_v33, 4  ;;  %v454_v35 = vmul.f32 %v442_v33, %v442_v33 }
 0x2eb   :  { %v596_v36 = vpop.f32.mrf.mxu0 }
 0x2ec   :  { %v449_v37 = vadd.f32 %v448_v34, %v442_v33  ;;  %v455_v38 = vrot.slane %v454_v35, 4 }
 0x2ed   :  { %v445_v39 = vpop.f32.mrf.mxu0 }
 0x2ee   :  { %v450_v40 = vrot.slane %v449_v37, 2  ;;  %v456_v41 = vadd.f32 %v455_v38, %v454_v35 }
 0x2ef   :  { %v597_v42 = vpop.f32.mrf.mxu0 }
 0x2f0   :  { %v451_v44 = vadd.f32 %v450_v40, %v449_v37  ;;  %v457_v45 = vrot.slane %v456_v41, 2 }
 0x2f2   :  { %v452_v46 = vrot.slane %v451_v44, 1  ;;  %v458_v47 = vadd.f32 %v457_v45, %v456_v41 }
 0x2f4   :  { %v459_v48 = vrot.slane %v458_v47, 1  ;;  %v453_v43 = vadd.f32 %v452_v46, %v451_v44 }
 0x2f6   :  { %v460_v49 = vadd.f32 %v459_v48, %v458_v47  ;;  %v461_v50 = vmul.f32 0.125, %v453_v43 }
 0x2f8   :  { %v462_v51 = vmul.f32 0.125, %v460_v49  ;;  %v463_v52 = vmul.f32 %v461_v50, %v461_v50 }
 0x2fa   :  { %v464_v53 = vsub.f32 %v462_v51, %v463_v52 }
 0x2fc   :  { %v465_v54 = vadd.f32 1e-05, %v464_v53 }
 0x2fe   :  { %634 = vrsqrt.f32 %v465_v54 }
 0x30b   :  { %v635_v55 = vpop.eup %634 }
 0x30c   :  { %v467_v56 = vmul.f32 %v635_v55, %v442_v33  ;;  %v468_v57 = vmul.f32 %v635_v55, %v461_v50 }
 0x30e   :  { %v469_v58 = vsub.f32 %v467_v56, %v468_v57 }
 0x310   :  { %470 = vst [vmem:[#allocation8] sm:$0xff] %v469_v58 }
 0x311   :  { %707 = shalt.err (!%p704_p5)
}
 0x312   :  { %480 = dma.vmem_to_hbm [thread:$0]  %s478_s16, 128, %s828_s5, [#allocation4]  }
 0x313   :  { %720 = dma.done.wait [#allocation4], 128  }
 0x314   :  { %721 = vsyncadd [#allocation4], 4294967168 }
 0x315   :  { %484 = vsyncpa [#allocation3], 1 }
 0x316   :  { %485 = vsyncpa [#allocation6], 1 }
 0x317   :  { %486 = vsyncpa [#allocation4], 1 }

</bundles_post_ra>
